<compile_context>
chip_gen: v6e
topology: v6e:2x2x1
jax: 0.10.0
libtpu: 0.0.40
codegen_flags: <defaults>
</compile_context>

<pallas_src>
import jax
import jax.numpy as jnp
import numpy as np
from jax.experimental import pallas as pl
from jax.experimental.pallas import tpu as pltpu

CLAMP_MIN = 1e-8
CLAMP_MAX = 1e8

# Per-grid-step VMEM budget for the (A + B + out) blocks.  Double-buffering
# keeps the pipeline <= 2x this, comfortably inside every generation's scoped
# VMEM default.
_STEP_BUDGET = 6 << 20
_MAX_COL_TILE = 16384          # lanes per column tile (multiple of 128)


def _ordinal_kernel_split(a_ref, b_ref, o_ref):
    """A and B arrive as separate lane-dense (TM, TC) blocks."""
    a = jnp.clip(a_ref[...], CLAMP_MIN, CLAMP_MAX)
    b = jnp.clip(b_ref[...], CLAMP_MIN, CLAMP_MAX)
    # 2-way softmax probability of B: e^b / (e^a + e^b) = 1 / (1 + e^(a-b)).
    # exp overflow saturates to the correct limit (0/1), matching torch.softmax
    # after the clamp.  exp + reciprocal go to the EUP slot.
    z = jnp.exp((a - b).astype(jnp.float32))
    o_ref[...] = pl.reciprocal(1.0 + z, approx=False).astype(o_ref.dtype)


def _ordinal_kernel_fullrow(x_ref, o_ref):
    """Fallback for small unaligned HW: one (TM, 2*HW) block, halves sliced here."""
    hw = o_ref.shape[-1]
    x = x_ref[...]
    a = jnp.clip(x[:, :hw], CLAMP_MIN, CLAMP_MAX)
    b = jnp.clip(x[:, hw:], CLAMP_MIN, CLAMP_MAX)
    z = jnp.exp((a - b).astype(jnp.float32))
    o_ref[...] = pl.reciprocal(1.0 + z, approx=False).astype(o_ref.dtype)


def _pick_col_tile(hwp, cap=_MAX_COL_TILE):
    """Largest multiple-of-128 divisor of hwp (hwp % 128 == 0) that is <= cap."""
    if hwp <= cap:
        return hwp
    q = hwp // 128
    for d in range(min(q, cap // 128), 0, -1):
        if q % d == 0:
            return 128 * d
    return 128


def _pick_row_tile(m_rows, bytes_per_row, budget=_STEP_BUDGET):
    rows = budget // bytes_per_row
    if rows >= m_rows:
        return m_rows                       # single full block along rows
    return max(8, (rows // 8) * 8)          # second-minor dim multiple of 8


def _compiler_params(semantics, step_bytes):
    # Explicit, generation-safe scoped-VMEM limit: 2x(blocks) + headroom,
    # clamped to [24 MiB, 32 MiB] (valid on v5e/v6e/v7x).
    vmem_limit = int(min(32 << 20, max(24 << 20, 2 * step_bytes + (4 << 20))))
    # TODO(synk): on v7x, CORE_PARALLEL / core_map could shard rows across both
    # TensorCores explicitly; plain "parallel" is kept here for portability.
    return pltpu.CompilerParams(dimension_semantics=semantics,
                                vmem_limit_bytes=vmem_limit)


def _cost_estimate(m, hw, itemsize):
    return pl.CostEstimate(flops=8 * m * hw,
                           transcendentals=m * hw,
                           bytes_accessed=3 * m * hw * itemsize)


def _b_index_map(col_shift):
    def index_map(i, j):
        return (i, j + col_shift)
    return index_map


def _forward_fullrow(x, N, K, H, W):
    HW = H * W
    M = N * K
    L = 2 * HW
    itemsize = jnp.dtype(x.dtype).itemsize
    x2d = x.reshape(M, L)                   # metadata-only reshape
    bytes_per_row = 3 * HW * itemsize       # (2*HW in + HW out) per row
    TM = _pick_row_tile(M, bytes_per_row)
    out2d = pl.pallas_call(
        _ordinal_kernel_fullrow,
        out_shape=jax.ShapeDtypeStruct((M, HW), x.dtype),
        grid=(pl.cdiv(M, TM),),
        in_specs=[pl.BlockSpec((TM, L), lambda i: (i, 0))],
        out_specs=pl.BlockSpec((TM, HW), lambda i: (i, 0)),
        compiler_params=_compiler_params(("parallel",), TM * bytes_per_row),
        cost_estimate=_cost_estimate(M, HW, itemsize),
    )(x2d)
    return out2d.reshape(N, K, H, W)


def ordinal_regression_forward(x):
    """OrdinalRegressionLayer.forward.  x: (N, C, H, W), C = 2*K -> (N, K, H, W)."""
    N, C, H, W = x.shape
    assert C % 2 == 0, "channel count must be 2 * ord_num"
    K = C // 2
    HW = H * W
    M = N * K
    itemsize = jnp.dtype(x.dtype).itemsize

    if HW % 128 != 0:
        # Unaligned spatial size: if an 8-row full-width block fits the budget,
        # use the always-legal full-row fallback; otherwise pad HW up to a
        # lane-tile multiple (rare; one extra copy but never a VMEM blow-up).
        if 8 * 3 * HW * itemsize <= _STEP_BUDGET:
            return _forward_fullrow(x, N, K, H, W)
        hwp = ((HW + 127) // 128) * 128
        x3 = jnp.pad(x.reshape(M, 2, HW), ((0, 0), (0, 0), (0, hwp - HW)))
    else:
        hwp = HW
        x3 = x.reshape(M, 2, HW)            # metadata-only reshape

    x2d = x3.reshape(M, 2 * hwp)            # row r = (n, k): [A_k (hwp) | B_k (hwp)]

    TC = _pick_col_tile(hwp)
    bytes_per_row = 3 * TC * itemsize       # A block + B block + out block
    TM = _pick_row_tile(M, bytes_per_row)
    col_shift = hwp // TC                   # B half starts this many column blocks in
    grid = (pl.cdiv(M, TM), hwp // TC)

    out2d = pl.pallas_call(
        _ordinal_kernel_split,
        out_shape=jax.ShapeDtypeStruct((M, hwp), x.dtype),
        grid=grid,
        in_specs=[
            pl.BlockSpec((TM, TC), lambda i, j: (i, j)),        # A half
            pl.BlockSpec((TM, TC), _b_index_map(col_shift)),    # B half
        ],
        out_specs=pl.BlockSpec((TM, TC), lambda i, j: (i, j)),
        compiler_params=_compiler_params(("parallel", "parallel"),
                                         TM * bytes_per_row),
        cost_estimate=_cost_estimate(M, HW, itemsize),
    )(x2d, x2d)

    if hwp != HW:
        out2d = out2d[:, :HW]
    return out2d.reshape(N, K, H, W)


def ordinal_regression_ref(x):
    """Pure-JAX reference of the PyTorch forward."""
    a = jnp.clip(x[:, 0::2], CLAMP_MIN, CLAMP_MAX).astype(jnp.float32)
    b = jnp.clip(x[:, 1::2], CLAMP_MIN, CLAMP_MAX).astype(jnp.float32)
    m = jnp.maximum(a, b)
    ea = jnp.exp(a - m)
    eb = jnp.exp(b - m)
    return (eb / (ea + eb)).astype(x.dtype)


if __name__ == "__main__":
    key = jax.random.PRNGKey(0)

    shapes = [
        (2, 8, 16, 16),    # primary: K=4, HW=256 (lane aligned)  -> split path
        (1, 2, 160, 160),  # HW=25600 > max col tile              -> split path, multi-column grid
        (1, 6, 7, 7),      # HW=49 (unaligned, small)             -> full-row fallback path
    ]
    for idx, shape in enumerate(shapes):
        k = jax.random.fold_in(key, idx)
        x = jax.random.normal(k, shape, dtype=jnp.float32) * 3.0
        out = jax.block_until_ready(ordinal_regression_forward(x))
        ref = jax.block_until_ready(ordinal_regression_ref(x))
        assert out.shape == (shape[0], shape[1] // 2, shape[2], shape[3])
        np.testing.assert_allclose(np.asarray(out), np.asarray(ref),
                                   rtol=1e-5, atol=1e-6)

    print("KERNEL_OK")
</pallas_src>

<mosaic_0001>
module attributes {stable_mosaic.version = 11 : i64} {
  func.func @_ordinal_kernel_split(%arg0: i32, %arg1: i32, %arg2: memref<8x256xf32, #tpu.memory_space<vmem>>, %arg3: memref<8x256xf32, #tpu.memory_space<vmem>>, %arg4: memref<8x256xf32, #tpu.memory_space<vmem>>) attributes {dimension_semantics = [#tpu.dimension_semantics<parallel>, #tpu.dimension_semantics<parallel>], iteration_bounds = array<i64: 1, 1>, scalar_prefetch = 0 : i64, scratch_operands = 0 : i64, tpu.core_type = #tpu.core_type<tc>, window_params = [{transform_indices = @transform_0, window_bounds = array<i64: 8, 256>}, {transform_indices = @transform_1, window_bounds = array<i64: 8, 256>}, {transform_indices = @transform_2, window_bounds = array<i64: 8, 256>}]} {
    %c0 = arith.constant 0 : index
    %c0_0 = arith.constant 0 : index
    %0 = vector.load %arg2[%c0, %c0_0] : memref<8x256xf32, #tpu.memory_space<vmem>>, vector<8x256xf32>
    %cst = arith.constant 9.99999993E-9 : f32
    %cst_1 = arith.constant 1.000000e+08 : f32
    %1 = vector.broadcast %cst : f32 to vector<8x256xf32>
    %2 = arith.maximumf %1, %0 : vector<8x256xf32>
    %3 = vector.broadcast %cst_1 : f32 to vector<8x256xf32>
    %4 = arith.minimumf %3, %2 : vector<8x256xf32>
    %c0_2 = arith.constant 0 : index
    %c0_3 = arith.constant 0 : index
    %5 = vector.load %arg3[%c0_2, %c0_3] : memref<8x256xf32, #tpu.memory_space<vmem>>, vector<8x256xf32>
    %cst_4 = arith.constant 9.99999993E-9 : f32
    %cst_5 = arith.constant 1.000000e+08 : f32
    %6 = vector.broadcast %cst_4 : f32 to vector<8x256xf32>
    %7 = arith.maximumf %6, %5 : vector<8x256xf32>
    %8 = vector.broadcast %cst_5 : f32 to vector<8x256xf32>
    %9 = arith.minimumf %8, %7 : vector<8x256xf32>
    %10 = arith.subf %4, %9 : vector<8x256xf32>
    %11 = math.exp %10 : vector<8x256xf32>
    %cst_6 = arith.constant 1.000000e+00 : f32
    %12 = vector.broadcast %cst_6 : f32 to vector<8x256xf32>
    %13 = arith.addf %12, %11 : vector<8x256xf32>
    %14 = tpu.reciprocal %13 : vector<8x256xf32> -> vector<8x256xf32>
    %c0_7 = arith.constant 0 : index
    %c0_8 = arith.constant 0 : index
    %15 = vector.load %arg4[%c0_7, %c0_8] : memref<8x256xf32, #tpu.memory_space<vmem>>, vector<8x256xf32>
    tpu.vector_store %arg4[%c0_7, %c0_8], %14 {strides = array<i32>} : memref<8x256xf32, #tpu.memory_space<vmem>>, vector<8x256xf32>,
    return
  }
  func.func @transform_0(%arg0: i32, %arg1: i32) -> (i32, i32) {
    %c0_i32 = arith.constant 0 : i32
    return %arg0, %arg1 : i32, i32
  }
  func.func @transform_1(%arg0: i32, %arg1: i32) -> (i32, i32) {
    %c1_i32 = arith.constant 1 : i32
    %0 = arith.addi %arg1, %c1_i32 : i32
    %c0_i32 = arith.constant 0 : i32
    return %arg0, %0 : i32, i32
  }
  func.func @transform_2(%arg0: i32, %arg1: i32) -> (i32, i32) {
    %c0_i32 = arith.constant 0 : i32
    return %arg0, %arg1 : i32, i32
  }
}

</mosaic_0001>

<bundles_post_ra>
// kernel: tpu_custom_call.1
= control target key start
LH: loop header
LB: loop body
LE: loop exit
PB: predicated region body
PF: predicated region fallthrough
CT: control target
= control target key end

     0   :  { %7 = vsyncpa [#allocation3], 0  ;;  %s190_s0 = inlined_call_operand.hbm [shape: f32[8,512], index: 0, kind: input, shape index: {}]   ;;  %s191_s1 = inlined_call_operand.hbm [shape: f32[8,512], index: 1, kind: input, shape index: {}]   ;;  %s192_s2 = inlined_call_operand.hbm [shape: f32[8,256], index: 2, kind: output, shape index: {}]  }
   0x1   :  { %8 = vsyncpa [#allocation6], 0 }
   0x2   :  { %9 = vsyncpa [#allocation4], 0  ;;  %s82_s11 = scalar_lea.hbm %s191_s1, 256  ;;  %s163_s12 = smov [#allocation2]  }
   0x3   :  { %s16_s13 = sshll.u32 %s163_s12, 4  ;;  %s164_s14 = smov [#allocation5]   ;;  %s17_s13 = int_to_ptr.vmem [resolvable:$true] %s16_s13 }
   0x4   :  { %s30_s15 = sshll.u32 %s164_s14, 4  ;;  %s102_s16 = scalar_lea.vmem %s17_s13, 256  ;;  %s31_s15 = int_to_ptr.vmem [resolvable:$true] %s30_s15 }
   0x5   :  { %p103_p0 = scmp.ne.s32.totalorder %s17_s13, %s102_s16  ;;  %p107_p1 = scmp.lt.s32.totalorder %s17_s13, %s17_s13 }
   0x6   :  { %p108_p2 = scmp.lt.s32.totalorder %s102_s16, %s102_s16 }
   0x8   :  { %p109_p3 = por %p108_p2, %p107_p1 }
   0xa   :  { %p110_p4 = pnand %p109_p3, %p103_p0 }
   0xc   :  { %113 = shalt.err (!%p110_p4)
}
   0xd   :  { %19 = dma.hbm_to_vmem [thread:$0]  %s190_s0, 256, %s17_s13, [#allocation3]  }
   0xe   :  { %s124_s19 = scalar_lea.vmem %s31_s15, 256  ;;  %p129_p6 = scmp.lt.s32.totalorder %s31_s15, %s31_s15 }
   0xf   :  { %p125_p5 = scmp.ne.s32.totalorder %s31_s15, %s124_s19  ;;  %p130_p7 = scmp.lt.s32.totalorder %s124_s19, %s124_s19 }
  0x11   :  { %p131_p8 = por %p130_p7, %p129_p6 }
  0x13   :  { %p132_p9 = pnand %p131_p8, %p125_p5 }
  0x15   :  { %135 = shalt.err (!%p132_p9)
}
  0x16   :  { %33 = dma.hbm_to_vmem [thread:$0]  %s82_s11, 256, %s31_s15, [#allocation6]  }
  0x17   :  { %157 = dma.done.wait [#allocation3], 256  }
  0x18   :  { %158 = vsyncadd [#allocation3], 4294967040 }
  0x19   :  { %159 = dma.done.wait [#allocation6], 256  }
  0x1a   :  { %160 = vsyncadd [#allocation6], 4294967040  ;;  %v42_v0 = vld [vmem:[#allocation2] sm:$0xff]  ;;  %v48_v1 = vld [vmem:[#allocation5] sm:$0xff]  ;;  %s165_s0 = smov [#allocation7]  }
  0x1b   :  { %v43_v2 = vld [vmem:[#allocation2 + $0x8] sm:$0xff]  ;;  %v44_v3 = vmax.f32 %v42_v0, 1e-08  ;;  %v50_v4 = vmax.f32 %v48_v1, 1e-08  ;;  %v49_v6 = vld [vmem:[#allocation5 + $0x8] sm:$0xff] }
  0x1c   :  { %v45_v5 = vmax.f32 %v43_v2, 1e-08  ;;  %v51_v10 = vmax.f32 %v49_v6, 1e-08  ;;  %s72_s1 = sshll.u32 %s165_s0, 4  ;;  %s73_s1 = int_to_ptr.vmem [resolvable:$true] %s72_s1 }
  0x1d   :  { %v46_v7 = vmin.f32 %v44_v3, 1e+08  ;;  %v52_v8 = vmin.f32 %v50_v4, 1e+08  ;;  %s137_s20 = scalar_lea.vmem %s73_s1, 256  ;;  %p142_p11 = scmp.lt.s32.totalorder %s73_s1, %s73_s1 }
  0x1e   :  { %v47_v9 = vmin.f32 %v45_v5, 1e+08  ;;  %v53_v12 = vmin.f32 %v51_v10, 1e+08  ;;  %p138_p10 = scmp.ne.s32.totalorder %s73_s1, %s137_s20  ;;  %p143_p12 = scmp.lt.s32.totalorder %s137_s20, %s137_s20 }
  0x1f   :  { %v54_v11 = vsub.f32 %v46_v7, %v52_v8 }
  0x20   :  { %v55_v14 = vsub.f32 %v47_v9, %v53_v12  ;;  %p144_p13 = por %p143_p12, %p142_p11 }
  0x21   :  { %v56_v13 = vmul.f32 1.442695, %v54_v11 }
  0x22   :  { %v58_v15 = vmul.f32 1.442695, %v55_v14  ;;  %p145_p0 = pnand %p144_p13, %p138_p10 }
  0x23   :  { %86 = vpow2.f32 %v56_v13 }
  0x24   :  { %88 = vpow2.f32 %v58_v15 }
  0x30   :  { %v87_v16 = vpop.eup %86 }
  0x31   :  { %v60_v17 = vadd.f32 1.0, %v87_v16  ;;  %v89_v18 = vpop.eup %88 }
  0x32   :  { %v61_v19 = vadd.f32 1.0, %v89_v18 }
  0x33   :  { %90 = vrcp.f32 %v60_v17 }
  0x34   :  { %92 = vrcp.f32 %v61_v19 }
  0x40   :  { %v91_v20 = vpop.eup %90 }
  0x41   :  { %64 = vst [vmem:[#allocation7] sm:$0xff] %v91_v20  ;;  %v93_v21 = vpop.eup %92 }
  0x42   :  { %65 = vst [vmem:[#allocation7 + $0x8] sm:$0xff] %v93_v21 }
  0x43   :  { %148 = shalt.err (!%p145_p0)
}
  0x44   :  { %75 = dma.vmem_to_hbm [thread:$0]  %s73_s1, 256, %s192_s2, [#allocation4]  }
  0x45   :  { %161 = dma.done.wait [#allocation4], 256  }
  0x46   :  { %162 = vsyncadd [#allocation4], 4294967040 }
  0x47   :  { %79 = vsyncpa [#allocation3], 1 }
  0x48   :  { %80 = vsyncpa [#allocation6], 1 }
  0x49   :  { %81 = vsyncpa [#allocation4], 1 }

</bundles_post_ra>
